<compile_context>
chip_gen: v7x
topology: tpu7x:2x2x1
jax: 0.10.0
libtpu: 0.0.40
codegen_flags: <defaults>
</compile_context>

<pallas_src>
import functools

import jax
import jax.numpy as jnp
from jax import lax
from jax.experimental import pallas as pl
from jax.experimental.pallas import tpu as pltpu


def _make_lstm_chunk_kernel(Tt, T_real, B, I, H, O_pad, needs_mask):
    """Builds a kernel that advances the recurrence by Tt timesteps per grid step."""

    def kernel(x_ref, h0_ref, c0_ref, w_ih_t_ref, w_hh_t_ref, b_gates_ref,
               w_out_ref, b_out_ref,
               out_ref, h_ref, c_ref,
               xg_ref, h_hist_ref):
        """
        x_ref:       [Tt, B, I]    chunk of inputs
        h0/c0_ref:   [B, H]        initial state (read only at chunk 0)
        w_ih_t_ref:  [I, 4H]       W_ih^T               (resident)
        w_hh_t_ref:  [H, 4H]       W_hh^T               (resident)
        b_gates_ref: [1, 4H]       b_ih + b_hh          (resident)
        w_out_ref:   [H, O_pad]    W_out^T, lane-padded (resident)
        b_out_ref:   [1, O_pad]
        out_ref:     [Tt, B, O_pad] chunk of decoder outputs
        h_ref/c_ref: [B, H]        state carried across chunks in VMEM
        xg_ref:      [Tt, B, 4H]   scratch: hoisted input projection
        h_hist_ref:  [Tt, B, H]    scratch: per-step hidden states for decoder
        """
        chunk = pl.program_id(0)

        @pl.when(chunk == 0)
        def _():
            h_ref[...] = h0_ref[...]
            c_ref[...] = c0_ref[...]

        # ---- Hoisted, non-recurrent input projection for the whole chunk ----
        # One [Tt*B, I] @ [I, 4H] MXU pass instead of Tt tiny K=I matmuls.
        x2d = x_ref[...].reshape(Tt * B, I)
        x_gates = (jnp.dot(x2d, w_ih_t_ref[...],
                           preferred_element_type=jnp.float32)
                   + b_gates_ref[...])
        xg_ref[...] = x_gates.reshape(Tt, B, 4 * H)

        w_hh_t = w_hh_t_ref[...]

        # ---- Serial recurrence: only h @ W_hh^T + elementwise on the chain ----
        def step(t, carry):
            h, c = carry
            gates = xg_ref[t] + jnp.dot(h, w_hh_t,
                                        preferred_element_type=jnp.float32)
            # Full-tensor activations ([B, 4H] is a single f32 vreg at H=32):
            s = jax.nn.sigmoid(gates)
            gt = jnp.tanh(gates)
            i_g = s[:, 0 * H:1 * H]
            f_g = s[:, 1 * H:2 * H]
            g_g = gt[:, 2 * H:3 * H]
            o_g = s[:, 3 * H:4 * H]
            c_new = f_g * c + i_g * g_g
            h_new = o_g * jnp.tanh(c_new)
            if needs_mask:
                # Padded tail steps of the last chunk: freeze the state.
                valid = (chunk * Tt + t) < T_real
                h_new = jnp.where(valid, h_new, h)
                c_new = jnp.where(valid, c_new, c)
            h_hist_ref[t] = h_new
            return h_new, c_new

        h_fin, c_fin = lax.fori_loop(0, Tt, step, (h_ref[...], c_ref[...]),
                                     unroll=True)
        h_ref[...] = h_fin
        c_ref[...] = c_fin

        # ---- Hoisted output decoder: one [Tt*B, H] @ [H, O_pad] matmul ----
        h_all = h_hist_ref[...].reshape(Tt * B, H)
        out = jax.nn.sigmoid(
            jnp.dot(h_all, w_out_ref[...], preferred_element_type=jnp.float32)
            + b_out_ref[...])
        out_ref[...] = out.reshape(Tt, B, O_pad).astype(out_ref.dtype)

    return kernel


@functools.partial(jax.jit, static_argnames=("chunk_size",))
def lstm_baseline_cell_seq(x_seq, h0, c0, w_ih, w_hh, b_ih, b_hh, w_out, b_out,
                           *, chunk_size=32):
    """Run T consecutive LSTMBaselineCell.forward() steps in one kernel.

    x_seq: [T, B, I]; h0, c0: [B, H]; w_ih: [4H, I]; w_hh: [4H, H];
    b_ih, b_hh: [4H]; w_out: [O, H]; b_out: [O].
    Returns (out [T, B, O], h_final [B, H], c_final [B, H]).
    """
    T, B, I = x_seq.shape
    H = h0.shape[-1]
    O = w_out.shape[0]
    O_pad = max(128, ((O + 127) // 128) * 128)   # lane-dense output width

    # Time-chunk size: amortizes per-grid-step overhead over Tt steps.
    Tt = min(T, chunk_size)
    T_pad = ((T + Tt - 1) // Tt) * Tt
    needs_mask = (T_pad != T)
    if needs_mask:
        x_seq = jnp.pad(x_seq, ((0, T_pad - T), (0, 0), (0, 0)))
    n_chunks = T_pad // Tt

    # One-time (jit-constant-folded for static params) weight prep.
    w_ih_t = w_ih.T.astype(jnp.float32)                          # [I, 4H]
    w_hh_t = w_hh.T.astype(jnp.float32)                          # [H, 4H]
    b_gates = (b_ih + b_hh).reshape(1, 4 * H).astype(jnp.float32)
    w_out_p = jnp.zeros((H, O_pad), jnp.float32).at[:, :O].set(w_out.T)
    b_out_p = jnp.zeros((1, O_pad), jnp.float32).at[:, :O].set(b_out)

    kernel = _make_lstm_chunk_kernel(Tt, T, B, I, H, O_pad, needs_mask)

    out_p, h_n, c_n = pl.pallas_call(
        kernel,
        out_shape=(jax.ShapeDtypeStruct((T_pad, B, O_pad), jnp.float32),
                   jax.ShapeDtypeStruct((B, H), jnp.float32),
                   jax.ShapeDtypeStruct((B, H), jnp.float32)),
        grid=(n_chunks,),
        in_specs=[
            pl.BlockSpec((Tt, B, I), lambda tc: (tc, 0, 0)),      # x chunk
            pl.BlockSpec((B, H), lambda tc: (0, 0)),              # h0 (resident)
            pl.BlockSpec((B, H), lambda tc: (0, 0)),              # c0 (resident)
            pl.BlockSpec((I, 4 * H), lambda tc: (0, 0)),          # W_ih^T
            pl.BlockSpec((H, 4 * H), lambda tc: (0, 0)),          # W_hh^T
            pl.BlockSpec((1, 4 * H), lambda tc: (0, 0)),          # b_ih + b_hh
            pl.BlockSpec((H, O_pad), lambda tc: (0, 0)),          # W_out^T (padded)
            pl.BlockSpec((1, O_pad), lambda tc: (0, 0)),          # b_out (padded)
        ],
        out_specs=(
            pl.BlockSpec((Tt, B, O_pad), lambda tc: (tc, 0, 0)),  # out chunk
            pl.BlockSpec((B, H), lambda tc: (0, 0)),   # h state: resident accumulator
            pl.BlockSpec((B, H), lambda tc: (0, 0)),   # c state: resident accumulator
        ),
        scratch_shapes=[
            pltpu.VMEM((Tt, B, 4 * H), jnp.float32),   # hoisted input projection
            pltpu.VMEM((Tt, B, H), jnp.float32),       # per-step h' for decoder
        ],
        compiler_params=pltpu.CompilerParams(
            dimension_semantics=("arbitrary",)),        # serial recurrence over chunks
    )(x_seq, h0, c0, w_ih_t, w_hh_t, b_gates, w_out_p, b_out_p)

    return out_p[:T, :, :O], h_n, c_n


def lstm_baseline_cell_step(x, h, c, w_ih, w_hh, b_ih, b_hh, w_out, b_out):
    """Single forward() step (T=1 specialization of the sequence kernel)."""
    out, h_n, c_n = lstm_baseline_cell_seq(
        x[None], h, c, w_ih, w_hh, b_ih, b_hh, w_out, b_out)
    return out[0], h_n, c_n


def _reference_seq(x_seq, h, c, w_ih, w_hh, b_ih, b_hh, w_out, b_out):
    H = h.shape[-1]
    outs = []
    for t in range(x_seq.shape[0]):
        gates = x_seq[t] @ w_ih.T + b_ih + h @ w_hh.T + b_hh
        i = jax.nn.sigmoid(gates[:, :H])
        f = jax.nn.sigmoid(gates[:, H:2 * H])
        g = jnp.tanh(gates[:, 2 * H:3 * H])
        o = jax.nn.sigmoid(gates[:, 3 * H:])
        c = f * c + i * g
        h = o * jnp.tanh(c)
        outs.append(jax.nn.sigmoid(h @ w_out.T + b_out))
    return jnp.stack(outs), h, c


if __name__ == "__main__":
    seq_len = 8
    batch_size = 8          # NOTE: larger B (>=128/256) is the path to MXU roofline
    input_size = 16
    hidden_size = 32
    out_size = 8

    key = jax.random.PRNGKey(0)
    k_x, k1, k2, k3, k4, k5, k6 = jax.random.split(key, 7)

    # Deterministic parameter init (mimics PyTorch uniform(-1/sqrt(H), 1/sqrt(H))).
    bound = 1.0 / jnp.sqrt(jnp.float32(hidden_size))
    w_ih = jax.random.uniform(k1, (4 * hidden_size, input_size), jnp.float32, -bound, bound)
    w_hh = jax.random.uniform(k2, (4 * hidden_size, hidden_size), jnp.float32, -bound, bound)
    b_ih = jax.random.uniform(k3, (4 * hidden_size,), jnp.float32, -bound, bound)
    b_hh = jax.random.uniform(k4, (4 * hidden_size,), jnp.float32, -bound, bound)
    w_out = jax.random.uniform(k5, (out_size, hidden_size), jnp.float32, -bound, bound)
    b_out = jax.random.uniform(k6, (out_size,), jnp.float32, -bound, bound)

    # reset(batch_size): h_init / c_init are zero parameters repeated over batch.
    h0 = jnp.zeros((batch_size, hidden_size), jnp.float32)
    c0 = jnp.zeros((batch_size, hidden_size), jnp.float32)

    # A sequence of T inputs == T consecutive forward() calls.
    x_seq = jax.random.normal(k_x, (seq_len, batch_size, input_size), jnp.float32)

    # --- Test 1: single chunk (T <= chunk_size, no padding) ---
    out, h_new, c_new = lstm_baseline_cell_seq(
        x_seq, h0, c0, w_ih, w_hh, b_ih, b_hh, w_out, b_out)
    jax.block_until_ready((out, h_new, c_new))

    out_ref, h_ref, c_ref = _reference_seq(
        x_seq, h0, c0, w_ih, w_hh, b_ih, b_hh, w_out, b_out)
    assert jnp.allclose(out, out_ref, atol=1e-5), "out mismatch"
    assert jnp.allclose(h_new, h_ref, atol=1e-5), "h mismatch"
    assert jnp.allclose(c_new, c_ref, atol=1e-5), "c mismatch"

    # --- Test 2: multi-chunk path with a padded (masked) final chunk ---
    x_seq2 = jax.random.normal(jax.random.PRNGKey(1), (10, batch_size, input_size),
                               jnp.float32)
    out2, h2, c2 = lstm_baseline_cell_seq(
        x_seq2, h0, c0, w_ih, w_hh, b_ih, b_hh, w_out, b_out, chunk_size=4)
    jax.block_until_ready((out2, h2, c2))
    out2_ref, h2_ref, c2_ref = _reference_seq(
        x_seq2, h0, c0, w_ih, w_hh, b_ih, b_hh, w_out, b_out)
    assert jnp.allclose(out2, out2_ref, atol=1e-5), "chunked out mismatch"
    assert jnp.allclose(h2, h2_ref, atol=1e-5), "chunked h mismatch"
    assert jnp.allclose(c2, c2_ref, atol=1e-5), "chunked c mismatch"

    # --- Test 3: single-step path (matches the module's forward() exactly) ---
    out1, h1, c1 = lstm_baseline_cell_step(
        x_seq[0], h0, c0, w_ih, w_hh, b_ih, b_hh, w_out, b_out)
    jax.block_until_ready((out1, h1, c1))
    assert jnp.allclose(out1, out_ref[0], atol=1e-5), "single-step out mismatch"

    print("KERNEL_OK")
</pallas_src>

<mosaic_0001>
module attributes {stable_mosaic.version = 11 : i64} {
  func.func @kernel(%arg0: i32, %arg1: memref<8x8x16xf32, #tpu.memory_space<vmem>>, %arg2: memref<8x32xf32, #tpu.memory_space<vmem>>, %arg3: memref<8x32xf32, #tpu.memory_space<vmem>>, %arg4: memref<16x128xf32, #tpu.memory_space<vmem>>, %arg5: memref<32x128xf32, #tpu.memory_space<vmem>>, %arg6: memref<1x128xf32, #tpu.memory_space<vmem>>, %arg7: memref<32x128xf32, #tpu.memory_space<vmem>>, %arg8: memref<1x128xf32, #tpu.memory_space<vmem>>, %arg9: memref<8x8x128xf32, #tpu.memory_space<vmem>>, %arg10: memref<8x32xf32, #tpu.memory_space<vmem>>, %arg11: memref<8x32xf32, #tpu.memory_space<vmem>>, %arg12: memref<8x8x128xf32, #tpu.memory_space<vmem>>, %arg13: memref<8x8x32xf32, #tpu.memory_space<vmem>>) attributes {dimension_semantics = [#tpu.dimension_semantics<arbitrary>], iteration_bounds = array<i64: 1>, scalar_prefetch = 0 : i64, scratch_operands = 2 : i64, tpu.core_type = #tpu.core_type<tc>, window_params = [{transform_indices = @transform_0, window_bounds = array<i64: 8, 8, 16>}, {pipeline_mode = #tpu.pipeline_mode<synchronous>, transform_indices = @transform_1, window_bounds = array<i64: 8, 32>}, {pipeline_mode = #tpu.pipeline_mode<synchronous>, transform_indices = @transform_2, window_bounds = array<i64: 8, 32>}, {pipeline_mode = #tpu.pipeline_mode<synchronous>, transform_indices = @transform_3, window_bounds = array<i64: 16, 128>}, {pipeline_mode = #tpu.pipeline_mode<synchronous>, transform_indices = @transform_4, window_bounds = array<i64: 32, 128>}, {pipeline_mode = #tpu.pipeline_mode<synchronous>, transform_indices = @transform_5, window_bounds = array<i64: 1, 128>}, {pipeline_mode = #tpu.pipeline_mode<synchronous>, transform_indices = @transform_6, window_bounds = array<i64: 32, 128>}, {pipeline_mode = #tpu.pipeline_mode<synchronous>, transform_indices = @transform_7, window_bounds = array<i64: 1, 128>}, {transform_indices = @transform_8, window_bounds = array<i64: 8, 8, 128>}, {pipeline_mode = #tpu.pipeline_mode<synchronous>, transform_indices = @transform_9, window_bounds = array<i64: 8, 32>}, {pipeline_mode = #tpu.pipeline_mode<synchronous>, transform_indices = @transform_10, window_bounds = array<i64: 8, 32>}]} {
    %c0_i32 = arith.constant 0 : i32
    %0 = arith.cmpi eq, %arg0, %c0_i32 : i32
    %1 = arith.extui %0 : i1 to i32
    %c0_i32_0 = arith.constant 0 : i32
    %2 = arith.cmpi ne, %1, %c0_i32_0 : i32
    scf.if %2 {
      %c0_81 = arith.constant 0 : index
      %c0_82 = arith.constant 0 : index
      %223 = vector.load %arg2[%c0_81, %c0_82] : memref<8x32xf32, #tpu.memory_space<vmem>>, vector<8x32xf32>
      %c0_83 = arith.constant 0 : index
      %c0_84 = arith.constant 0 : index
      %224 = vector.load %arg10[%c0_83, %c0_84] : memref<8x32xf32, #tpu.memory_space<vmem>>, vector<8x32xf32>
      tpu.vector_store %arg10[%c0_83, %c0_84], %223 {strides = array<i32>} : memref<8x32xf32, #tpu.memory_space<vmem>>, vector<8x32xf32>,
      %c0_85 = arith.constant 0 : index
      %c0_86 = arith.constant 0 : index
      %225 = vector.load %arg3[%c0_85, %c0_86] : memref<8x32xf32, #tpu.memory_space<vmem>>, vector<8x32xf32>
      %c0_87 = arith.constant 0 : index
      %c0_88 = arith.constant 0 : index
      %226 = vector.load %arg11[%c0_87, %c0_88] : memref<8x32xf32, #tpu.memory_space<vmem>>, vector<8x32xf32>
      tpu.vector_store %arg11[%c0_87, %c0_88], %225 {strides = array<i32>} : memref<8x32xf32, #tpu.memory_space<vmem>>, vector<8x32xf32>,
    } else {
    }
    %c0 = arith.constant 0 : index
    %c0_1 = arith.constant 0 : index
    %c0_2 = arith.constant 0 : index
    %3 = vector.load %arg1[%c0, %c0_1, %c0_2] : memref<8x8x16xf32, #tpu.memory_space<vmem>>, vector<8x8x16xf32>
    %4 = vector.shape_cast %3 : vector<8x8x16xf32> to vector<64x16xf32>
    %c0_3 = arith.constant 0 : index
    %c0_4 = arith.constant 0 : index
    %5 = vector.load %arg4[%c0_3, %c0_4] : memref<16x128xf32, #tpu.memory_space<vmem>>, vector<16x128xf32>
    %cst = arith.constant dense<0.000000e+00> : vector<64x128xf32>
    %6 = tpu.matmul %4, %5, %cst {dimension_numbers = #tpu.dot_dimension_numbers<[1], [0], [0], [1], [0, 0, 1, 1], [], []>} : vector<64x16xf32>, vector<16x128xf32>, vector<64x128xf32> -> vector<64x128xf32>
    %c0_5 = arith.constant 0 : index
    %c0_6 = arith.constant 0 : index
    %7 = vector.load %arg6[%c0_5, %c0_6] : memref<1x128xf32, #tpu.memory_space<vmem>>, vector<1x128xf32>
    %8 = vector.broadcast %7 : vector<1x128xf32> to vector<64x128xf32>
    %9 = arith.addf %6, %8 : vector<64x128xf32>
    %10 = vector.shape_cast %9 : vector<64x128xf32> to vector<8x8x128xf32>
    %c0_7 = arith.constant 0 : index
    %c0_8 = arith.constant 0 : index
    %c0_9 = arith.constant 0 : index
    %11 = vector.load %arg12[%c0_7, %c0_8, %c0_9] : memref<8x8x128xf32, #tpu.memory_space<vmem>>, vector<8x8x128xf32>
    tpu.vector_store %arg12[%c0_7, %c0_8, %c0_9], %10 {strides = array<i32>} : memref<8x8x128xf32, #tpu.memory_space<vmem>>, vector<8x8x128xf32>,
    %c0_10 = arith.constant 0 : index
    %c0_11 = arith.constant 0 : index
    %12 = vector.load %arg5[%c0_10, %c0_11] : memref<32x128xf32, #tpu.memory_space<vmem>>, vector<32x128xf32>
    %c0_12 = arith.constant 0 : index
    %c0_13 = arith.constant 0 : index
    %13 = vector.load %arg10[%c0_12, %c0_13] : memref<8x32xf32, #tpu.memory_space<vmem>>, vector<8x32xf32>
    %c0_14 = arith.constant 0 : index
    %c0_15 = arith.constant 0 : index
    %14 = vector.load %arg11[%c0_14, %c0_15] : memref<8x32xf32, #tpu.memory_space<vmem>>, vector<8x32xf32>
    %c0_i32_16 = arith.constant 0 : i32
    %15 = arith.index_cast %c0_i32_16 : i32 to index
    %c0_17 = arith.constant 0 : index
    %c0_18 = arith.constant 0 : index
    %16 = vector.load %arg12[%15, %c0_17, %c0_18] : memref<8x8x128xf32, #tpu.memory_space<vmem>>, vector<1x8x128xf32>
    %17 = vector.shape_cast %16 : vector<1x8x128xf32> to vector<8x128xf32>
    %cst_19 = arith.constant dense<0.000000e+00> : vector<8x128xf32>
    %18 = tpu.matmul %13, %12, %cst_19 {dimension_numbers = #tpu.dot_dimension_numbers<[1], [0], [0], [1], [0, 0, 1, 1], [], []>} : vector<8x32xf32>, vector<32x128xf32>, vector<8x128xf32> -> vector<8x128xf32>
    %19 = arith.addf %17, %18 : vector<8x128xf32>
    %20 = arith.negf %19 : vector<8x128xf32>
    %21 = math.exp %20 : vector<8x128xf32>
    %cst_20 = arith.constant 1.000000e+00 : f32
    %22 = vector.broadcast %cst_20 : f32 to vector<8x128xf32>
    %23 = arith.addf %22, %21 : vector<8x128xf32>
    %24 = arith.divf %22, %23 : vector<8x128xf32>
    %25 = math.tanh %19 : vector<8x128xf32>
    %26 = vector.extract_strided_slice %24 {offsets = [0, 0], sizes = [8, 32], strides = [1, 1]} : vector<8x128xf32> to vector<8x32xf32>
    %27 = vector.extract_strided_slice %24 {offsets = [0, 32], sizes = [8, 32], strides = [1, 1]} : vector<8x128xf32> to vector<8x32xf32>
    %28 = vector.extract_strided_slice %25 {offsets = [0, 64], sizes = [8, 32], strides = [1, 1]} : vector<8x128xf32> to vector<8x32xf32>
    %29 = vector.extract_strided_slice %24 {offsets = [0, 96], sizes = [8, 32], strides = [1, 1]} : vector<8x128xf32> to vector<8x32xf32>
    %30 = arith.mulf %27, %14 : vector<8x32xf32>
    %31 = arith.mulf %26, %28 : vector<8x32xf32>
    %32 = arith.addf %30, %31 : vector<8x32xf32>
    %33 = math.tanh %32 : vector<8x32xf32>
    %34 = arith.mulf %29, %33 : vector<8x32xf32>
    %35 = arith.index_cast %c0_i32_16 : i32 to index
    %c0_21 = arith.constant 0 : index
    %c0_22 = arith.constant 0 : index
    %36 = vector.load %arg13[%35, %c0_21, %c0_22] : memref<8x8x32xf32, #tpu.memory_space<vmem>>, vector<1x8x32xf32>
    %37 = vector.shape_cast %36 : vector<1x8x32xf32> to vector<8x32xf32>
    %38 = vector.shape_cast %34 : vector<8x32xf32> to vector<1x8x32xf32>
    tpu.vector_store %arg13[%35, %c0_21, %c0_22], %38 {strides = array<i32>} : memref<8x8x32xf32, #tpu.memory_space<vmem>>, vector<1x8x32xf32>,
    %c1_i32 = arith.constant 1 : i32
    %39 = arith.index_cast %c1_i32 : i32 to index
    %c0_23 = arith.constant 0 : index
    %c0_24 = arith.constant 0 : index
    %40 = vector.load %arg12[%39, %c0_23, %c0_24] : memref<8x8x128xf32, #tpu.memory_space<vmem>>, vector<1x8x128xf32>
    %41 = vector.shape_cast %40 : vector<1x8x128xf32> to vector<8x128xf32>
    %cst_25 = arith.constant dense<0.000000e+00> : vector<8x128xf32>
    %42 = tpu.matmul %34, %12, %cst_25 {dimension_numbers = #tpu.dot_dimension_numbers<[1], [0], [0], [1], [0, 0, 1, 1], [], []>} : vector<8x32xf32>, vector<32x128xf32>, vector<8x128xf32> -> vector<8x128xf32>
    %43 = arith.addf %41, %42 : vector<8x128xf32>
    %44 = arith.negf %43 : vector<8x128xf32>
    %45 = math.exp %44 : vector<8x128xf32>
    %cst_26 = arith.constant 1.000000e+00 : f32
    %46 = vector.broadcast %cst_26 : f32 to vector<8x128xf32>
    %47 = arith.addf %46, %45 : vector<8x128xf32>
    %48 = arith.divf %46, %47 : vector<8x128xf32>
    %49 = math.tanh %43 : vector<8x128xf32>
    %50 = vector.extract_strided_slice %48 {offsets = [0, 0], sizes = [8, 32], strides = [1, 1]} : vector<8x128xf32> to vector<8x32xf32>
    %51 = vector.extract_strided_slice %48 {offsets = [0, 32], sizes = [8, 32], strides = [1, 1]} : vector<8x128xf32> to vector<8x32xf32>
    %52 = vector.extract_strided_slice %49 {offsets = [0, 64], sizes = [8, 32], strides = [1, 1]} : vector<8x128xf32> to vector<8x32xf32>
    %53 = vector.extract_strided_slice %48 {offsets = [0, 96], sizes = [8, 32], strides = [1, 1]} : vector<8x128xf32> to vector<8x32xf32>
    %54 = arith.mulf %51, %32 : vector<8x32xf32>
    %55 = arith.mulf %50, %52 : vector<8x32xf32>
    %56 = arith.addf %54, %55 : vector<8x32xf32>
    %57 = math.tanh %56 : vector<8x32xf32>
    %58 = arith.mulf %53, %57 : vector<8x32xf32>
    %59 = arith.index_cast %c1_i32 : i32 to index
    %c0_27 = arith.constant 0 : index
    %c0_28 = arith.constant 0 : index
    %60 = vector.load %arg13[%59, %c0_27, %c0_28] : memref<8x8x32xf32, #tpu.memory_space<vmem>>, vector<1x8x32xf32>
    %61 = vector.shape_cast %60 : vector<1x8x32xf32> to vector<8x32xf32>
    %62 = vector.shape_cast %58 : vector<8x32xf32> to vector<1x8x32xf32>
    tpu.vector_store %arg13[%59, %c0_27, %c0_28], %62 {strides = array<i32>} : memref<8x8x32xf32, #tpu.memory_space<vmem>>, vector<1x8x32xf32>,
    %c2_i32 = arith.constant 2 : i32
    %63 = arith.index_cast %c2_i32 : i32 to index
    %c0_29 = arith.constant 0 : index
    %c0_30 = arith.constant 0 : index
    %64 = vector.load %arg12[%63, %c0_29, %c0_30] : memref<8x8x128xf32, #tpu.memory_space<vmem>>, vector<1x8x128xf32>
    %65 = vector.shape_cast %64 : vector<1x8x128xf32> to vector<8x128xf32>
    %cst_31 = arith.constant dense<0.000000e+00> : vector<8x128xf32>
    %66 = tpu.matmul %58, %12, %cst_31 {dimension_numbers = #tpu.dot_dimension_numbers<[1], [0], [0], [1], [0, 0, 1, 1], [], []>} : vector<8x32xf32>, vector<32x128xf32>, vector<8x128xf32> -> vector<8x128xf32>
    %67 = arith.addf %65, %66 : vector<8x128xf32>
    %68 = arith.negf %67 : vector<8x128xf32>
    %69 = math.exp %68 : vector<8x128xf32>
    %cst_32 = arith.constant 1.000000e+00 : f32
    %70 = vector.broadcast %cst_32 : f32 to vector<8x128xf32>
    %71 = arith.addf %70, %69 : vector<8x128xf32>
    %72 = arith.divf %70, %71 : vector<8x128xf32>
    %73 = math.tanh %67 : vector<8x128xf32>
    %74 = vector.extract_strided_slice %72 {offsets = [0, 0], sizes = [8, 32], strides = [1, 1]} : vector<8x128xf32> to vector<8x32xf32>
    %75 = vector.extract_strided_slice %72 {offsets = [0, 32], sizes = [8, 32], strides = [1, 1]} : vector<8x128xf32> to vector<8x32xf32>
    %76 = vector.extract_strided_slice %73 {offsets = [0, 64], sizes = [8, 32], strides = [1, 1]} : vector<8x128xf32> to vector<8x32xf32>
    %77 = vector.extract_strided_slice %72 {offsets = [0, 96], sizes = [8, 32], strides = [1, 1]} : vector<8x128xf32> to vector<8x32xf32>
    %78 = arith.mulf %75, %56 : vector<8x32xf32>
    %79 = arith.mulf %74, %76 : vector<8x32xf32>
    %80 = arith.addf %78, %79 : vector<8x32xf32>
    %81 = math.tanh %80 : vector<8x32xf32>
    %82 = arith.mulf %77, %81 : vector<8x32xf32>
    %83 = arith.index_cast %c2_i32 : i32 to index
    %c0_33 = arith.constant 0 : index
    %c0_34 = arith.constant 0 : index
    %84 = vector.load %arg13[%83, %c0_33, %c0_34] : memref<8x8x32xf32, #tpu.memory_space<vmem>>, vector<1x8x32xf32>
    %85 = vector.shape_cast %84 : vector<1x8x32xf32> to vector<8x32xf32>
    %86 = vector.shape_cast %82 : vector<8x32xf32> to vector<1x8x32xf32>
    tpu.vector_store %arg13[%83, %c0_33, %c0_34], %86 {strides = array<i32>} : memref<8x8x32xf32, #tpu.memory_space<vmem>>, vector<1x8x32xf32>,
    %c3_i32 = arith.constant 3 : i32
    %87 = arith.index_cast %c3_i32 : i32 to index
    %c0_35 = arith.constant 0 : index
    %c0_36 = arith.constant 0 : index
    %88 = vector.load %arg12[%87, %c0_35, %c0_36] : memref<8x8x128xf32, #tpu.memory_space<vmem>>, vector<1x8x128xf32>
    %89 = vector.shape_cast %88 : vector<1x8x128xf32> to vector<8x128xf32>
    %cst_37 = arith.constant dense<0.000000e+00> : vector<8x128xf32>
    %90 = tpu.matmul %82, %12, %cst_37 {dimension_numbers = #tpu.dot_dimension_numbers<[1], [0], [0], [1], [0, 0, 1, 1], [], []>} : vector<8x32xf32>, vector<32x128xf32>, vector<8x128xf32> -> vector<8x128xf32>
    %91 = arith.addf %89, %90 : vector<8x128xf32>
    %92 = arith.negf %91 : vector<8x128xf32>
    %93 = math.exp %92 : vector<8x128xf32>
    %cst_38 = arith.constant 1.000000e+00 : f32
    %94 = vector.broadcast %cst_38 : f32 to vector<8x128xf32>
    %95 = arith.addf %94, %93 : vector<8x128xf32>
    %96 = arith.divf %94, %95 : vector<8x128xf32>
    %97 = math.tanh %91 : vector<8x128xf32>
    %98 = vector.extract_strided_slice %96 {offsets = [0, 0], sizes = [8, 32], strides = [1, 1]} : vector<8x128xf32> to vector<8x32xf32>
    %99 = vector.extract_strided_slice %96 {offsets = [0, 32], sizes = [8, 32], strides = [1, 1]} : vector<8x128xf32> to vector<8x32xf32>
    %100 = vector.extract_strided_slice %97 {offsets = [0, 64], sizes = [8, 32], strides = [1, 1]} : vector<8x128xf32> to vector<8x32xf32>
    %101 = vector.extract_strided_slice %96 {offsets = [0, 96], sizes = [8, 32], strides = [1, 1]} : vector<8x128xf32> to vector<8x32xf32>
    %102 = arith.mulf %99, %80 : vector<8x32xf32>
    %103 = arith.mulf %98, %100 : vector<8x32xf32>
    %104 = arith.addf %102, %103 : vector<8x32xf32>
    %105 = math.tanh %104 : vector<8x32xf32>
    %106 = arith.mulf %101, %105 : vector<8x32xf32>
    %107 = arith.index_cast %c3_i32 : i32 to index
    %c0_39 = arith.constant 0 : index
    %c0_40 = arith.constant 0 : index
    %108 = vector.load %arg13[%107, %c0_39, %c0_40] : memref<8x8x32xf32, #tpu.memory_space<vmem>>, vector<1x8x32xf32>
    %109 = vector.shape_cast %108 : vector<1x8x32xf32> to vector<8x32xf32>
    %110 = vector.shape_cast %106 : vector<8x32xf32> to vector<1x8x32xf32>
    tpu.vector_store %arg13[%107, %c0_39, %c0_40], %110 {strides = array<i32>} : memref<8x8x32xf32, #tpu.memory_space<vmem>>, vector<1x8x32xf32>,
    %c4_i32 = arith.constant 4 : i32
    %111 = arith.index_cast %c4_i32 : i32 to index
    %c0_41 = arith.constant 0 : index
    %c0_42 = arith.constant 0 : index
    %112 = vector.load %arg12[%111, %c0_41, %c0_42] : memref<8x8x128xf32, #tpu.memory_space<vmem>>, vector<1x8x128xf32>
    %113 = vector.shape_cast %112 : vector<1x8x128xf32> to vector<8x128xf32>
    %cst_43 = arith.constant dense<0.000000e+00> : vector<8x128xf32>
    %114 = tpu.matmul %106, %12, %cst_43 {dimension_numbers = #tpu.dot_dimension_numbers<[1], [0], [0], [1], [0, 0, 1, 1], [], []>} : vector<8x32xf32>, vector<32x128xf32>, vector<8x128xf32> -> vector<8x128xf32>
    %115 = arith.addf %113, %114 : vector<8x128xf32>
    %116 = arith.negf %115 : vector<8x128xf32>
    %117 = math.exp %116 : vector<8x128xf32>
    %cst_44 = arith.constant 1.000000e+00 : f32
    %118 = vector.broadcast %cst_44 : f32 to vector<8x128xf32>
    %119 = arith.addf %118, %117 : vector<8x128xf32>
    %120 = arith.divf %118, %119 : vector<8x128xf32>
    %121 = math.tanh %115 : vector<8x128xf32>
    %122 = vector.extract_strided_slice %120 {offsets = [0, 0], sizes = [8, 32], strides = [1, 1]} : vector<8x128xf32> to vector<8x32xf32>
    %123 = vector.extract_strided_slice %120 {offsets = [0, 32], sizes = [8, 32], strides = [1, 1]} : vector<8x128xf32> to vector<8x32xf32>
    %124 = vector.extract_strided_slice %121 {offsets = [0, 64], sizes = [8, 32], strides = [1, 1]} : vector<8x128xf32> to vector<8x32xf32>
    %125 = vector.extract_strided_slice %120 {offsets = [0, 96], sizes = [8, 32], strides = [1, 1]} : vector<8x128xf32> to vector<8x32xf32>
    %126 = arith.mulf %123, %104 : vector<8x32xf32>
    %127 = arith.mulf %122, %124 : vector<8x32xf32>
    %128 = arith.addf %126, %127 : vector<8x32xf32>
    %129 = math.tanh %128 : vector<8x32xf32>
    %130 = arith.mulf %125, %129 : vector<8x32xf32>
    %131 = arith.index_cast %c4_i32 : i32 to index
    %c0_45 = arith.constant 0 : index
    %c0_46 = arith.constant 0 : index
    %132 = vector.load %arg13[%131, %c0_45, %c0_46] : memref<8x8x32xf32, #tpu.memory_space<vmem>>, vector<1x8x32xf32>
    %133 = vector.shape_cast %132 : vector<1x8x32xf32> to vector<8x32xf32>
    %134 = vector.shape_cast %130 : vector<8x32xf32> to vector<1x8x32xf32>
    tpu.vector_store %arg13[%131, %c0_45, %c0_46], %134 {strides = array<i32>} : memref<8x8x32xf32, #tpu.memory_space<vmem>>, vector<1x8x32xf32>,
    %c5_i32 = arith.constant 5 : i32
    %135 = arith.index_cast %c5_i32 : i32 to index
    %c0_47 = arith.constant 0 : index
    %c0_48 = arith.constant 0 : index
    %136 = vector.load %arg12[%135, %c0_47, %c0_48] : memref<8x8x128xf32, #tpu.memory_space<vmem>>, vector<1x8x128xf32>
    %137 = vector.shape_cast %136 : vector<1x8x128xf32> to vector<8x128xf32>
    %cst_49 = arith.constant dense<0.000000e+00> : vector<8x128xf32>
    %138 = tpu.matmul %130, %12, %cst_49 {dimension_numbers = #tpu.dot_dimension_numbers<[1], [0], [0], [1], [0, 0, 1, 1], [], []>} : vector<8x32xf32>, vector<32x128xf32>, vector<8x128xf32> -> vector<8x128xf32>
    %139 = arith.addf %137, %138 : vector<8x128xf32>
    %140 = arith.negf %139 : vector<8x128xf32>
    %141 = math.exp %140 : vector<8x128xf32>
    %cst_50 = arith.constant 1.000000e+00 : f32
    %142 = vector.broadcast %cst_50 : f32 to vector<8x128xf32>
    %143 = arith.addf %142, %141 : vector<8x128xf32>
    %144 = arith.divf %142, %143 : vector<8x128xf32>
    %145 = math.tanh %139 : vector<8x128xf32>
    %146 = vector.extract_strided_slice %144 {offsets = [0, 0], sizes = [8, 32], strides = [1, 1]} : vector<8x128xf32> to vector<8x32xf32>
    %147 = vector.extract_strided_slice %144 {offsets = [0, 32], sizes = [8, 32], strides = [1, 1]} : vector<8x128xf32> to vector<8x32xf32>
    %148 = vector.extract_strided_slice %145 {offsets = [0, 64], sizes = [8, 32], strides = [1, 1]} : vector<8x128xf32> to vector<8x32xf32>
    %149 = vector.extract_strided_slice %144 {offsets = [0, 96], sizes = [8, 32], strides = [1, 1]} : vector<8x128xf32> to vector<8x32xf32>
    %150 = arith.mulf %147, %128 : vector<8x32xf32>
    %151 = arith.mulf %146, %148 : vector<8x32xf32>
    %152 = arith.addf %150, %151 : vector<8x32xf32>
    %153 = math.tanh %152 : vector<8x32xf32>
    %154 = arith.mulf %149, %153 : vector<8x32xf32>
    %155 = arith.index_cast %c5_i32 : i32 to index
    %c0_51 = arith.constant 0 : index
    %c0_52 = arith.constant 0 : index
    %156 = vector.load %arg13[%155, %c0_51, %c0_52] : memref<8x8x32xf32, #tpu.memory_space<vmem>>, vector<1x8x32xf32>
    %157 = vector.shape_cast %156 : vector<1x8x32xf32> to vector<8x32xf32>
    %158 = vector.shape_cast %154 : vector<8x32xf32> to vector<1x8x32xf32>
    tpu.vector_store %arg13[%155, %c0_51, %c0_52], %158 {strides = array<i32>} : memref<8x8x32xf32, #tpu.memory_space<vmem>>, vector<1x8x32xf32>,
    %c6_i32 = arith.constant 6 : i32
    %159 = arith.index_cast %c6_i32 : i32 to index
    %c0_53 = arith.constant 0 : index
    %c0_54 = arith.constant 0 : index
    %160 = vector.load %arg12[%159, %c0_53, %c0_54] : memref<8x8x128xf32, #tpu.memory_space<vmem>>, vector<1x8x128xf32>
    %161 = vector.shape_cast %160 : vector<1x8x128xf32> to vector<8x128xf32>
    %cst_55 = arith.constant dense<0.000000e+00> : vector<8x128xf32>
    %162 = tpu.matmul %154, %12, %cst_55 {dimension_numbers = #tpu.dot_dimension_numbers<[1], [0], [0], [1], [0, 0, 1, 1], [], []>} : vector<8x32xf32>, vector<32x128xf32>, vector<8x128xf32> -> vector<8x128xf32>
    %163 = arith.addf %161, %162 : vector<8x128xf32>
    %164 = arith.negf %163 : vector<8x128xf32>
    %165 = math.exp %164 : vector<8x128xf32>
    %cst_56 = arith.constant 1.000000e+00 : f32
    %166 = vector.broadcast %cst_56 : f32 to vector<8x128xf32>
    %167 = arith.addf %166, %165 : vector<8x128xf32>
    %168 = arith.divf %166, %167 : vector<8x128xf32>
    %169 = math.tanh %163 : vector<8x128xf32>
    %170 = vector.extract_strided_slice %168 {offsets = [0, 0], sizes = [8, 32], strides = [1, 1]} : vector<8x128xf32> to vector<8x32xf32>
    %171 = vector.extract_strided_slice %168 {offsets = [0, 32], sizes = [8, 32], strides = [1, 1]} : vector<8x128xf32> to vector<8x32xf32>
    %172 = vector.extract_strided_slice %169 {offsets = [0, 64], sizes = [8, 32], strides = [1, 1]} : vector<8x128xf32> to vector<8x32xf32>
    %173 = vector.extract_strided_slice %168 {offsets = [0, 96], sizes = [8, 32], strides = [1, 1]} : vector<8x128xf32> to vector<8x32xf32>
    %174 = arith.mulf %171, %152 : vector<8x32xf32>
    %175 = arith.mulf %170, %172 : vector<8x32xf32>
    %176 = arith.addf %174, %175 : vector<8x32xf32>
    %177 = math.tanh %176 : vector<8x32xf32>
    %178 = arith.mulf %173, %177 : vector<8x32xf32>
    %179 = arith.index_cast %c6_i32 : i32 to index
    %c0_57 = arith.constant 0 : index
    %c0_58 = arith.constant 0 : index
    %180 = vector.load %arg13[%179, %c0_57, %c0_58] : memref<8x8x32xf32, #tpu.memory_space<vmem>>, vector<1x8x32xf32>
    %181 = vector.shape_cast %180 : vector<1x8x32xf32> to vector<8x32xf32>
    %182 = vector.shape_cast %178 : vector<8x32xf32> to vector<1x8x32xf32>
    tpu.vector_store %arg13[%179, %c0_57, %c0_58], %182 {strides = array<i32>} : memref<8x8x32xf32, #tpu.memory_space<vmem>>, vector<1x8x32xf32>,
    %c7_i32 = arith.constant 7 : i32
    %183 = arith.index_cast %c7_i32 : i32 to index
    %c0_59 = arith.constant 0 : index
    %c0_60 = arith.constant 0 : index
    %184 = vector.load %arg12[%183, %c0_59, %c0_60] : memref<8x8x128xf32, #tpu.memory_space<vmem>>, vector<1x8x128xf32>
    %185 = vector.shape_cast %184 : vector<1x8x128xf32> to vector<8x128xf32>
    %cst_61 = arith.constant dense<0.000000e+00> : vector<8x128xf32>
    %186 = tpu.matmul %178, %12, %cst_61 {dimension_numbers = #tpu.dot_dimension_numbers<[1], [0], [0], [1], [0, 0, 1, 1], [], []>} : vector<8x32xf32>, vector<32x128xf32>, vector<8x128xf32> -> vector<8x128xf32>
    %187 = arith.addf %185, %186 : vector<8x128xf32>
    %188 = arith.negf %187 : vector<8x128xf32>
    %189 = math.exp %188 : vector<8x128xf32>
    %cst_62 = arith.constant 1.000000e+00 : f32
    %190 = vector.broadcast %cst_62 : f32 to vector<8x128xf32>
    %191 = arith.addf %190, %189 : vector<8x128xf32>
    %192 = arith.divf %190, %191 : vector<8x128xf32>
    %193 = math.tanh %187 : vector<8x128xf32>
    %194 = vector.extract_strided_slice %192 {offsets = [0, 0], sizes = [8, 32], strides = [1, 1]} : vector<8x128xf32> to vector<8x32xf32>
    %195 = vector.extract_strided_slice %192 {offsets = [0, 32], sizes = [8, 32], strides = [1, 1]} : vector<8x128xf32> to vector<8x32xf32>
    %196 = vector.extract_strided_slice %193 {offsets = [0, 64], sizes = [8, 32], strides = [1, 1]} : vector<8x128xf32> to vector<8x32xf32>
    %197 = vector.extract_strided_slice %192 {offsets = [0, 96], sizes = [8, 32], strides = [1, 1]} : vector<8x128xf32> to vector<8x32xf32>
    %198 = arith.mulf %195, %176 : vector<8x32xf32>
    %199 = arith.mulf %194, %196 : vector<8x32xf32>
    %200 = arith.addf %198, %199 : vector<8x32xf32>
    %201 = math.tanh %200 : vector<8x32xf32>
    %202 = arith.mulf %197, %201 : vector<8x32xf32>
    %203 = arith.index_cast %c7_i32 : i32 to index
    %c0_63 = arith.constant 0 : index
    %c0_64 = arith.constant 0 : index
    %204 = vector.load %arg13[%203, %c0_63, %c0_64] : memref<8x8x32xf32, #tpu.memory_space<vmem>>, vector<1x8x32xf32>
    %205 = vector.shape_cast %204 : vector<1x8x32xf32> to vector<8x32xf32>
    %206 = vector.shape_cast %202 : vector<8x32xf32> to vector<1x8x32xf32>
    tpu.vector_store %arg13[%203, %c0_63, %c0_64], %206 {strides = array<i32>} : memref<8x8x32xf32, #tpu.memory_space<vmem>>, vector<1x8x32xf32>,
    %c8_i32 = arith.constant 8 : i32
    %c0_65 = arith.constant 0 : index
    %c0_66 = arith.constant 0 : index
    %207 = vector.load %arg10[%c0_65, %c0_66] : memref<8x32xf32, #tpu.memory_space<vmem>>, vector<8x32xf32>
    tpu.vector_store %arg10[%c0_65, %c0_66], %202 {strides = array<i32>} : memref<8x32xf32, #tpu.memory_space<vmem>>, vector<8x32xf32>,
    %c0_67 = arith.constant 0 : index
    %c0_68 = arith.constant 0 : index
    %208 = vector.load %arg11[%c0_67, %c0_68] : memref<8x32xf32, #tpu.memory_space<vmem>>, vector<8x32xf32>
    tpu.vector_store %arg11[%c0_67, %c0_68], %200 {strides = array<i32>} : memref<8x32xf32, #tpu.memory_space<vmem>>, vector<8x32xf32>,
    %c0_69 = arith.constant 0 : index
    %c0_70 = arith.constant 0 : index
    %c0_71 = arith.constant 0 : index
    %209 = vector.load %arg13[%c0_69, %c0_70, %c0_71] : memref<8x8x32xf32, #tpu.memory_space<vmem>>, vector<8x8x32xf32>
    %210 = vector.shape_cast %209 : vector<8x8x32xf32> to vector<64x32xf32>
    %c0_72 = arith.constant 0 : index
    %c0_73 = arith.constant 0 : index
    %211 = vector.load %arg7[%c0_72, %c0_73] : memref<32x128xf32, #tpu.memory_space<vmem>>, vector<32x128xf32>
    %cst_74 = arith.constant dense<0.000000e+00> : vector<64x128xf32>
    %212 = tpu.matmul %210, %211, %cst_74 {dimension_numbers = #tpu.dot_dimension_numbers<[1], [0], [0], [1], [0, 0, 1, 1], [], []>} : vector<64x32xf32>, vector<32x128xf32>, vector<64x128xf32> -> vector<64x128xf32>
    %c0_75 = arith.constant 0 : index
    %c0_76 = arith.constant 0 : index
    %213 = vector.load %arg8[%c0_75, %c0_76] : memref<1x128xf32, #tpu.memory_space<vmem>>, vector<1x128xf32>
    %214 = vector.broadcast %213 : vector<1x128xf32> to vector<64x128xf32>
    %215 = arith.addf %212, %214 : vector<64x128xf32>
    %216 = arith.negf %215 : vector<64x128xf32>
    %217 = math.exp %216 : vector<64x128xf32>
    %cst_77 = arith.constant 1.000000e+00 : f32
    %218 = vector.broadcast %cst_77 : f32 to vector<64x128xf32>
    %219 = arith.addf %218, %217 : vector<64x128xf32>
    %220 = arith.divf %218, %219 : vector<64x128xf32>
    %221 = vector.shape_cast %220 : vector<64x128xf32> to vector<8x8x128xf32>
    %c0_78 = arith.constant 0 : index
    %c0_79 = arith.constant 0 : index
    %c0_80 = arith.constant 0 : index
    %222 = vector.load %arg9[%c0_78, %c0_79, %c0_80] : memref<8x8x128xf32, #tpu.memory_space<vmem>>, vector<8x8x128xf32>
    tpu.vector_store %arg9[%c0_78, %c0_79, %c0_80], %221 {strides = array<i32>} : memref<8x8x128xf32, #tpu.memory_space<vmem>>, vector<8x8x128xf32>,
    return
  }
  func.func @transform_0(%arg0: i32) -> (i32, i32, i32) {
    %c0_i32 = arith.constant 0 : i32
    %c0_i32_0 = arith.constant 0 : i32
    %c0_i32_1 = arith.constant 0 : i32
    return %arg0, %c0_i32, %c0_i32_0 : i32, i32, i32
  }
  func.func @transform_1(%arg0: i32) -> (i32, i32) {
    %c0_i32 = arith.constant 0 : i32
    %c0_i32_0 = arith.constant 0 : i32
    %c0_i32_1 = arith.constant 0 : i32
    return %c0_i32, %c0_i32_0 : i32, i32
  }
  func.func @transform_2(%arg0: i32) -> (i32, i32) {
    %c0_i32 = arith.constant 0 : i32
    %c0_i32_0 = arith.constant 0 : i32
    %c0_i32_1 = arith.constant 0 : i32
    return %c0_i32, %c0_i32_0 : i32, i32
  }
  func.func @transform_3(%arg0: i32) -> (i32, i32) {
    %c0_i32 = arith.constant 0 : i32
    %c0_i32_0 = arith.constant 0 : i32
    %c0_i32_1 = arith.constant 0 : i32
    return %c0_i32, %c0_i32_0 : i32, i32
  }
  func.func @transform_4(%arg0: i32) -> (i32, i32) {
    %c0_i32 = arith.constant 0 : i32
    %c0_i32_0 = arith.constant 0 : i32
    %c0_i32_1 = arith.constant 0 : i32
    return %c0_i32, %c0_i32_0 : i32, i32
  }
  func.func @transform_5(%arg0: i32) -> (i32, i32) {
    %c0_i32 = arith.constant 0 : i32
    %c0_i32_0 = arith.constant 0 : i32
    %c0_i32_1 = arith.constant 0 : i32
    return %c0_i32, %c0_i32_0 : i32, i32
  }
  func.func @transform_6(%arg0: i32) -> (i32, i32) {
    %c0_i32 = arith.constant 0 : i32
    %c0_i32_0 = arith.constant 0 : i32
    %c0_i32_1 = arith.constant 0 : i32
    return %c0_i32, %c0_i32_0 : i32, i32
  }
  func.func @transform_7(%arg0: i32) -> (i32, i32) {
    %c0_i32 = arith.constant 0 : i32
    %c0_i32_0 = arith.constant 0 : i32
    %c0_i32_1 = arith.constant 0 : i32
    return %c0_i32, %c0_i32_0 : i32, i32
  }
  func.func @transform_8(%arg0: i32) -> (i32, i32, i32) {
    %c0_i32 = arith.constant 0 : i32
    %c0_i32_0 = arith.constant 0 : i32
    %c0_i32_1 = arith.constant 0 : i32
    return %arg0, %c0_i32, %c0_i32_0 : i32, i32, i32
  }
  func.func @transform_9(%arg0: i32) -> (i32, i32) {
    %c0_i32 = arith.constant 0 : i32
    %c0_i32_0 = arith.constant 0 : i32
    %c0_i32_1 = arith.constant 0 : i32
    return %c0_i32, %c0_i32_0 : i32, i32
  }
  func.func @transform_10(%arg0: i32) -> (i32, i32) {
    %c0_i32 = arith.constant 0 : i32
    %c0_i32_0 = arith.constant 0 : i32
    %c0_i32_1 = arith.constant 0 : i32
    return %c0_i32, %c0_i32_0 : i32, i32
  }
}

</mosaic_0001>

<bundles_post_ra>
// kernel: lstm_baseline_cell_seq.1
= control target key start
LH: loop header
LB: loop body
LE: loop exit
PB: predicated region body
PF: predicated region fallthrough
CT: control target
= control target key end

     0   :  { %16 = vsyncpa [#allocation5], 0  ;;  %vm60_vm0 = vcmask 130048   ;;  %vm39_vm1 = vcmask 261120   ;;  %s2093_s0 = inlined_call_operand.vmem [shape: f32[8,8,16], index: 0, kind: input, shape index: {}]   ;;  %s2094_s1 = inlined_call_operand.vmem [shape: f32[8,32], index: 1, kind: input, shape index: {}]   ;;  %s2095_s2 = inlined_call_operand.vmem [shape: f32[8,32], index: 2, kind: input, shape index: {}]   ;;  %s2096_s3 = inlined_call_operand.vmem [shape: f32[16,128], index: 3, kind: input, shape index: {}]   ;;  %s2097_s4 = inlined_call_operand.vmem [shape: f32[32,128], index: 4, kind: input, shape index: {}]   ;;  %s2098_s5 = inlined_call_operand.vmem [shape: f32[1,128], index: 5, kind: input, shape index: {}]   ;;  %s2099_s6 = inlined_call_operand.vmem [shape: f32[32,128], index: 6, kind: input, shape index: {}]   ;;  %s2100_s7 = inlined_call_operand.vmem [shape: f32[1,128], index: 7, kind: input, shape index: {}]   ;;  %s2101_s8 = inlined_call_operand.hbm [shape: f32[8,8,128], index: 8, kind: output, shape index: {0}]   ;;  %s2102_s9 = inlined_call_operand.hbm [shape: f32[8,32], index: 9, kind: output, shape index: {1}]   ;;  %s2103_s10 = inlined_call_operand.hbm [shape: f32[8,32], index: 10, kind: output, shape index: {2}]  }
   0x1   :  { %v51_v0 = vld [vmem:[%s2096_s3] sm:$0xff]  ;;  %v52_v1 = vld [vmem:[%s2096_s3 + $0x8] sm:$0xff] }
   0x2   :  { %v47_v2 = vld [vmem:[%s2093_s0 + $0x20] sm:$0xff]  ;;  %v1529_v3 = vpack.c.bf16 %v52_v1, %v51_v0  ;;  %v199_v5 = vld [vmem:[%s2097_s4 + $0x8] sm:$0xff] }
   0x3   :  { %1415 = vmatprep.mubr.msk.f32.mxu1 %vm60_vm0, %v47_v2  ;;  %v198_v4 = vld [vmem:[%s2097_s4] sm:$0xff]  ;;  %v48_v7 = vld [vmem:[%s2093_s0 + $0x28] sm:$0xff] }
   0x4   :  { %v43_v6 = vld [vmem:[%s2093_s0] sm:$0xff]  ;;  %1589 = vmatprep.subr.bf16.mxu1 %v1529_v3  ;;  %1530 = vmatprep.subr.bf16.mxu0 %v1529_v3  ;;  %v1856_v8 = vpack.c.bf16 %v199_v5, %v198_v4  ;;  %v44_v9 = vld [vmem:[%s2093_s0 + $0x8] sm:$0xff] }
   0x5   :  { %1590 = vmatpush3.bf16.msra.mxu1 %v1529_v3  ;;  %1532 = vmatpush3.bf16.msra.mxu0 %v1529_v3  ;;  %v38_v10 = vld [vmem:[%s2094_s1] sm:$0xff] }
   0x6   :  { %17 = vsyncpa [#allocation7], 0  ;;  %v1768_v11 = vmov 0.0|0.0   ;;  %v49_v12 = vld [vmem:[%s2093_s0 + $0x30] sm:$0xff]  ;;  %1409 = vmatprep.mubr.msk.f32.mxu0 %vm60_vm0, %v43_v6  ;;  %v201_v14 = vld [vmem:[%s2097_s4 + $0x18] sm:$0xff]  ;;  %40 = vst.msk [vmem:[#allocation6] sm:$0xff] %vm39_vm1, %v38_v10 }
   0x7   :  { %1533 = vmatprep.subr.bf16.mxu1 %v1768_v11  ;;  %v200_v13 = vld [vmem:[%s2097_s4 + $0x10] sm:$0xff]  ;;  %1545 = vmatprep.subr.bf16.mxu0 %v1768_v11  ;;  %v50_v15 = vld [vmem:[%s2093_s0 + $0x38] sm:$0xff]  ;;  %vm1769_vm2 = vmmov 0   ;;  %v1770_v17 = vmov 0.0   ;;  %v41_v19 = vld [vmem:[%s2095_s2] sm:$0xff]  ;;  %s1771_s2 = smov 64  }
   0x8   :  { %1416 = vmatmul.mubr.msk.f32.vlgmr.msra.gmra.mrb[0].mxu1 %vm60_vm0, %v48_v7  ;;  %1410 = vmatmul.mubr.msk.f32.vlgmr.msra.gmra.mrb[0].mxu0 %vm60_vm0, %v44_v9  ;;  %v1884_v16 = vpack.c.bf16 %v201_v14, %v200_v13  ;;  %42 = vst.msk [vmem:[#allocation8] sm:$0xff] %vm39_vm1, %v41_v19  ;;  %v1914_v24 = vld [vmem:[%s2098_s5] ss:$0 sm:$0xff]  ;;  %s1772_s20 = smov 32   ;;  %v45_v61 = vld [vmem:[%s2093_s0 + $0x10] sm:$0xff]  ;;  %v46_v62 = vld [vmem:[%s2093_s0 + $0x18] sm:$0xff] }
   0x9   :  { %1535 = vmatpush3.bf16.msra.mxu1 %v1856_v8  ;;  %1418 = vmatprep.mubr.msk.f32.mxu1 %vm60_vm0, %v49_v12  ;;  %s1774_s11 = smov [#allocation6]  }
   0xa   :  { %1536 = vmatprep.subr.bf16.mxu1 %v1768_v11  ;;  %1547 = vmatpush3.bf16.msra.mxu0 %v1856_v8  ;;  %s1276_s12 = sshll.u32 %s1774_s11, 4  ;;  %s1277_s12 = int_to_ptr.vmem [resolvable:$true] %s1276_s12 }
   0xb   :  { %1548 = vmatprep.subr.bf16.mxu0 %v1768_v11  ;;  %1412 = vmatprep.mubr.msk.f32.mxu0 %vm60_vm0, %v45_v61  ;;  %s1698_s13 = scalar_lea.vmem %s1277_s12, 128  ;;  %p1703_p1 = scmp.lt.s32.totalorder %s1277_s12, %s1277_s12 }
   0xc   :  { %1419 = vmatmul.mubr.msk.f32.gmra.mrb[2].mxu1 %vm60_vm0, %v50_v15  ;;  %1413 = vmatmul.mubr.msk.f32.gmra.mrb[2].mxu0 %vm60_vm0, %v46_v62  ;;  %p1699_p0 = scmp.ne.s32.totalorder %s1277_s12, %s1698_s13  ;;  %p1704_p2 = scmp.lt.s32.totalorder %s1698_s13, %s1698_s13 }
   0xd   :  { %1538 = vmatpush3.bf16.msra.mxu1 %v1884_v16  ;;  %1429 = vmatprep.mubr.msk.f32.mxu1 %vm1769_vm2, %v1770_v17  ;;  %v202_v18 = vld [vmem:[#allocation6] sm:$0xff] }
   0xe   :  { %1539 = vmatprep.subr.bf16.mxu1 %v1768_v11  ;;  %1550 = vmatpush3.bf16.msra.mxu0 %v1884_v16  ;;  %p1705_p3 = por %p1704_p2, %p1703_p1 }
   0xf   :  { %1557 = vmatprep.subr.bf16.mxu0 %v1768_v11  ;;  %v203_v32 = vld [vmem:[#allocation8] sm:$0xff]  ;;  %1451 = vmatprep.mubr.msk.f32.mxu0 %vm1769_vm2, %v1770_v17 }
  0x10   :  { %1430 = vmatmul.mubr.msk.f32.vlgmr.msra.gmra.mrb[4].mxu1 %vm39_vm1, %v202_v18  ;;  %p1706_p4 = pnand %p1705_p3, %p1699_p0 }
  0x11   :  { %1541 = vmatpush3.bf16.msra.mxu1 %v1856_v8  ;;  %1440 = vmatprep.mubr.msk.f32.mxu1 %vm1769_vm2, %v1770_v17 }
  0x12   :  { %1542 = vmatprep.subr.bf16.mxu1 %v1768_v11 }
  0x15   :  { %1544 = vmatpush3.bf16.msra.mxu1 %v1884_v16 }
  0x16   :  { %1551 = vmatprep.subr.bf16.mxu1 %v1768_v11 }
  0xdb   :  { %v1907_v20 = vpop.f32.mrb[0].mxu1  ;;  %v1411_v21 = vpop.f32.mrb[0].mxu0 }
  0xdc   :  { %v1909_v22 = vpop.f32.mrb[1].mxu1  ;;  %v151_v23 = vpop.f32.mrb[1].mxu0  ;;  %v157_v47 = vadd.f32 %v1411_v21, %v1914_v24 }
  0xdd   :  { %v152_v27 = vadd.f32 %v1914_v24, %v151_v23 }
  0xdf   :  { %v1916_v25 = vpop.f32.mrb[2].mxu1  ;;  %v1414_v2 = vpop.f32.mrb[2].mxu0 }
  0xe0   :  { %v1918_v26 = vpop.f32.mrb[3].mxu1  ;;  %v161_v3 = vpop.f32.mrb[3].mxu0 }
  0xe1   :  { %v162_v5 = vadd.f32 %v1914_v24, %v161_v3  ;;  %v177_v3 = vadd.f32 %v1907_v20, %v1914_v24 }
  0xe3   :  { %v275_v28 = vpop.f32.mrb[4].mxu1 }
  0xe4   :  { %v279_v29 = vadd.f32 %v275_v28, %v152_v27  ;;  %v1431_v30 = vpop.f32.mrb[5].mxu1 }
  0xe6   :  { %1602 = vtanh.f32 %v279_v29  ;;  %v1311_v33 = vmul.f32 -1.442695, %v279_v29 }
  0xe8   :  { %1604 = vpow2.f32 %v1311_v33 }
  0xf0   :  { %v1603_v31 = vpop.eup %1602 }
  0xf1   :  { %293 = vrot.lane.b32.xlu0 %v1603_v31, %s1771_s2 }
  0xf2   :  { %v1605_v34 = vpop.eup %1604 }
  0xf3   :  { %v283_v35 = vadd.f32 1.0, %v1605_v34 }
  0xf5   :  { %288 = vrot.lane.b32.xlu0 %v203_v32, %s1772_s20  ;;  %1606 = vrcp.f32 %v283_v35  ;;  %v167_v32 = vadd.f32 %v1414_v2, %v1914_v24 }
  0xff   :  { %v1607_v36 = vpop.eup %1606 }
 0x163   :  { %v294_v37 = vpop.permute.xlu0 %293 }
 0x164   :  { %v296_v38 = vmul.f32 %v1607_v36, %v294_v37 }
 0x166   :  { %298 = vrot.lane.b32.xlu1 %v296_v38, %s1772_s20 }
 0x167   :  { %v289_v39 = vpop.permute.xlu0 %288 }
 0x168   :  { %v291_v40 = vmul.f32 %v1607_v36, %v289_v39 }
 0x1d8   :  { %v299_v41 = vpop.permute.xlu1 %298 }
 0x1d9   :  { %v301_v42 = vadd.f32 %v299_v41, %v291_v40 }
 0x1db   :  { %1608 = vtanh.f32 %v301_v42 }
 0x1e5   :  { %v1609_v43 = vpop.eup %1608 }
 0x1e6   :  { %304 = vrot.lane.b32.xlu1 %v1609_v43, %s1771_s2 }
 0x258   :  { %v305_v44 = vpop.permute.xlu1 %304 }
 0x259   :  { %v307_v45 = vmul.f32 %v1607_v36, %v305_v44 }
 0x25b   :  { %309 = vrot.lane.b32.xlu0 %v307_v45, %s1772_s20 }
 0x2cd   :  { %v310_v46 = vpop.permute.xlu0 %309 }
 0x2ce   :  { %312 = vst.msk [vmem:[#allocation3] sm:$0xff] %vm39_vm1, %v310_v46  ;;  %1441 = vmatmul.mubr.msk.f32.vlgmr.msra.gmra.mrb[6].mxu1 %vm39_vm1, %v310_v46 }
 0x2cf   :  { %1553 = vmatpush3.bf16.msra.mxu1 %v1856_v8  ;;  %1462 = vmatprep.mubr.msk.f32.mxu1 %vm1769_vm2, %v1770_v17 }
 0x2d0   :  { %1554 = vmatprep.subr.bf16.mxu1 %v1768_v11 }
 0x2d3   :  { %1556 = vmatpush3.bf16.msra.mxu1 %v1884_v16 }
 0x2d4   :  { %1563 = vmatprep.subr.bf16.mxu1 %v1768_v11 }
 0x3a1   :  { %v383_v48 = vpop.f32.mrb[6].mxu1 }
 0x3a2   :  { %v387_v49 = vadd.f32 %v383_v48, %v157_v47  ;;  %v1442_v50 = vpop.f32.mrb[7].mxu1 }
 0x3a3   :  { %v172_v50 = vadd.f32 %v1914_v24, %v1909_v22 }
 0x3a4   :  { %1610 = vtanh.f32 %v387_v49  ;;  %v1313_v52 = vmul.f32 -1.442695, %v387_v49 }
 0x3a6   :  { %1612 = vpow2.f32 %v1313_v52 }
 0x3ae   :  { %v1611_v51 = vpop.eup %1610 }
 0x3af   :  { %397 = vrot.lane.b32.xlu1 %v1611_v51, %s1771_s2 }
 0x3b0   :  { %v1613_v53 = vpop.eup %1612 }
 0x3b1   :  { %v391_v54 = vadd.f32 1.0, %v1613_v53 }
 0x3b3   :  { %1614 = vrcp.f32 %v391_v54 }
 0x3bd   :  { %v1615_v55 = vpop.eup %1614 }
 0x3be   :  { %v395_v58 = vmul.f32 %v1615_v55, %v301_v42 }
 0x421   :  { %v398_v56 = vpop.permute.xlu1 %397 }
 0x422   :  { %v400_v57 = vmul.f32 %v1615_v55, %v398_v56 }
 0x424   :  { %402 = vrot.lane.b32.xlu0 %v400_v57, %s1772_s20 }
 0x496   :  { %v403_v59 = vpop.permute.xlu0 %402 }
 0x497   :  { %v405_v60 = vadd.f32 %v403_v59, %v395_v58 }
 0x499   :  { %1616 = vtanh.f32 %v405_v60 }
 0x4a3   :  { %v1617_v63 = vpop.eup %1616 }
 0x4a4   :  { %408 = vrot.lane.b32.xlu1 %v1617_v63, %s1771_s2 }
 0x516   :  { %v409_v0 = vpop.permute.xlu1 %408 }
 0x517   :  { %v411_v1 = vmul.f32 %v1615_v55, %v409_v0 }
 0x519   :  { %413 = vrot.lane.b32.xlu0 %v411_v1, %s1772_s20 }
 0x58b   :  { %v414_v4 = vpop.permute.xlu0 %413 }
 0x58c   :  { %417 = vst.msk [vmem:[#allocation3 + $0x8] sm:$0xff] %vm39_vm1, %v414_v4  ;;  %1452 = vmatmul.mubr.msk.f32.vlgmr.msra.gmra.mrb[4].mxu0 %vm39_vm1, %v414_v4 }
 0x58d   :  { %1559 = vmatpush3.bf16.msra.mxu0 %v1856_v8  ;;  %1473 = vmatprep.mubr.msk.f32.mxu0 %vm1769_vm2, %v1770_v17 }
 0x58e   :  { %1560 = vmatprep.subr.bf16.mxu0 %v1768_v11 }
 0x591   :  { %1562 = vmatpush3.bf16.msra.mxu0 %v1884_v16 }
 0x592   :  { %1569 = vmatprep.subr.bf16.mxu0 %v1768_v11 }
 0x65f   :  { %v488_v6 = vpop.f32.mrb[4].mxu0 }
 0x660   :  { %v492_v7 = vadd.f32 %v488_v6, %v162_v5  ;;  %v1453_v9 = vpop.f32.mrb[5].mxu0 }
 0x662   :  { %1618 = vtanh.f32 %v492_v7  ;;  %v1315_v12 = vmul.f32 -1.442695, %v492_v7 }
 0x664   :  { %1620 = vpow2.f32 %v1315_v12 }
 0x66c   :  { %v1619_v10 = vpop.eup %1618 }
 0x66d   :  { %502 = vrot.lane.b32.xlu1 %v1619_v10, %s1771_s2 }
 0x66e   :  { %v1621_v13 = vpop.eup %1620 }
 0x66f   :  { %v496_v14 = vadd.f32 1.0, %v1621_v13 }
 0x671   :  { %1622 = vrcp.f32 %v496_v14  ;;  %v1062_v14 = vld [vmem:[%s2099_s6] sm:$0xff] }
 0x67b   :  { %v1623_v15 = vpop.eup %1622 }
 0x67c   :  { %v500_v21 = vmul.f32 %v1623_v15, %v405_v60 }
 0x6df   :  { %v503_v18 = vpop.permute.xlu1 %502 }
 0x6e0   :  { %v505_v19 = vmul.f32 %v1623_v15, %v503_v18 }
 0x6e2   :  { %507 = vrot.lane.b32.xlu0 %v505_v19, %s1772_s20 }
 0x754   :  { %v508_v23 = vpop.permute.xlu0 %507 }
 0x755   :  { %v510_v27 = vadd.f32 %v508_v23, %v500_v21 }
 0x757   :  { %1624 = vtanh.f32 %v510_v27 }
 0x761   :  { %v1625_v28 = vpop.eup %1624 }
 0x762   :  { %513 = vrot.lane.b32.xlu1 %v1625_v28, %s1771_s2  ;;  %v1065_v28 = vld [vmem:[%s2099_s6 + $0x18] sm:$0xff] }
 0x7d4   :  { %v514_v29 = vpop.permute.xlu1 %513 }
 0x7d5   :  { %v516_v30 = vmul.f32 %v1623_v15, %v514_v29  ;;  %v1063_v15 = vld [vmem:[%s2099_s6 + $0x8] sm:$0xff] }
 0x7d6   :  { %v1581_v18 = vpack.c.bf16 %v1063_v15, %v1062_v14 }
 0x7d7   :  { %518 = vrot.lane.b32.xlu0 %v516_v30, %s1772_s20 }
 0x849   :  { %v519_v31 = vpop.permute.xlu0 %518 }
 0x84a   :  { %522 = vst.msk [vmem:[#allocation3 + $0x10] sm:$0xff] %vm39_vm1, %v519_v31  ;;  %1463 = vmatmul.mubr.msk.f32.vlgmr.msra.gmra.mrb[8].mxu1 %vm39_vm1, %v519_v31  ;;  %v1054_v31 = vld [vmem:[#allocation3] sm:$0xff] }
 0x84b   :  { %1565 = vmatpush3.bf16.msra.mxu1 %v1856_v8  ;;  %1484 = vmatprep.mubr.msk.f32.mxu1 %vm1769_vm2, %v1770_v17 }
 0x84c   :  { %1566 = vmatprep.subr.bf16.mxu1 %v1768_v11 }
 0x84f   :  { %1568 = vmatpush3.bf16.msra.mxu1 %v1884_v16 }
 0x850   :  { %1575 = vmatprep.subr.bf16.mxu1 %v1768_v11 }
 0x91d   :  { %v593_v33 = vpop.f32.mrb[8].mxu1 }
 0x91e   :  { %v597_v34 = vadd.f32 %v593_v33, %v167_v32  ;;  %v1464_v35 = vpop.f32.mrb[9].mxu1  ;;  %v1055_v32 = vld [vmem:[#allocation3 + $0x8] sm:$0xff]  ;;  %v1056_v33 = vld [vmem:[#allocation3 + $0x10] sm:$0xff] }
 0x920   :  { %1626 = vtanh.f32 %v597_v34  ;;  %v1317_v37 = vmul.f32 -1.442695, %v597_v34 }
 0x922   :  { %1628 = vpow2.f32 %v1317_v37  ;;  %v182_v37 = vadd.f32 %v1914_v24, %v1918_v26 }
 0x92a   :  { %v1627_v36 = vpop.eup %1626 }
 0x92b   :  { %607 = vrot.lane.b32.xlu1 %v1627_v36, %s1771_s2 }
 0x92c   :  { %v1629_v38 = vpop.eup %1628 }
 0x92d   :  { %v601_v39 = vadd.f32 1.0, %v1629_v38 }
 0x92f   :  { %1630 = vrcp.f32 %v601_v39 }
 0x939   :  { %v1631_v40 = vpop.eup %1630 }
 0x93a   :  { %v605_v43 = vmul.f32 %v1631_v40, %v510_v27  ;;  %v1064_v27 = vld [vmem:[%s2099_s6 + $0x10] sm:$0xff] }
 0x93b   :  { %v1585_v29 = vpack.c.bf16 %v1065_v28, %v1064_v27 }
 0x99d   :  { %v608_v41 = vpop.permute.xlu1 %607 }
 0x99e   :  { %v610_v42 = vmul.f32 %v1631_v40, %v608_v41  ;;  %v2029_v41 = vld [vmem:[%s2100_s7] ss:$0 sm:$0xff]  ;;  %s1773_s7 = smov 96  }
 0x9a0   :  { %612 = vrot.lane.b32.xlu0 %v610_v42, %s1772_s20 }
 0xa12   :  { %v613_v44 = vpop.permute.xlu0 %612 }
 0xa13   :  { %v615_v45 = vadd.f32 %v613_v44, %v605_v43 }
 0xa15   :  { %1632 = vtanh.f32 %v615_v45 }
 0xa1f   :  { %v1633_v46 = vpop.eup %1632 }
 0xa20   :  { %618 = vrot.lane.b32.xlu1 %v1633_v46, %s1771_s2 }
 0xa92   :  { %v619_v47 = vpop.permute.xlu1 %618 }
 0xa93   :  { %v621_v48 = vmul.f32 %v1631_v40, %v619_v47 }
 0xa95   :  { %623 = vrot.lane.b32.xlu0 %v621_v48, %s1772_s20 }
 0xb07   :  { %v624_v49 = vpop.permute.xlu0 %623 }
 0xb08   :  { %627 = vst.msk [vmem:[#allocation3 + $0x18] sm:$0xff] %vm39_vm1, %v624_v49  ;;  %1474 = vmatmul.mubr.msk.f32.vlgmr.msra.gmra.mrb[6].mxu0 %vm39_vm1, %v624_v49 }
 0xb09   :  { %1571 = vmatpush3.bf16.msra.mxu0 %v1856_v8  ;;  %1495 = vmatprep.mubr.msk.f32.mxu0 %vm1769_vm2, %v1770_v17 }
 0xb0a   :  { %1572 = vmatprep.subr.bf16.mxu0 %v1768_v11 }
 0xb0d   :  { %1574 = vmatpush3.bf16.msra.mxu0 %v1884_v16 }
 0xb0e   :  { %1582 = vmatprep.subr.bf16.mxu0 %v1581_v18 }
 0xb0f   :  { %v1057_v34 = vld [vmem:[#allocation3 + $0x18] sm:$0xff] }
 0xbdb   :  { %v698_v51 = vpop.f32.mrb[6].mxu0 }
 0xbdc   :  { %v702_v52 = vadd.f32 %v698_v51, %v172_v50  ;;  %v1475_v53 = vpop.f32.mrb[7].mxu0 }
 0xbde   :  { %1634 = vtanh.f32 %v702_v52  ;;  %v1319_v55 = vmul.f32 -1.442695, %v702_v52 }
 0xbe0   :  { %1636 = vpow2.f32 %v1319_v55 }
 0xbe8   :  { %v1635_v54 = vpop.eup %1634 }
 0xbe9   :  { %712 = vrot.lane.b32.xlu1 %v1635_v54, %s1771_s2 }
 0xbea   :  { %v1637_v56 = vpop.eup %1636 }
 0xbeb   :  { %v706_v57 = vadd.f32 1.0, %v1637_v56 }
 0xbed   :  { %1638 = vrcp.f32 %v706_v57 }
 0xbf7   :  { %v1639_v58 = vpop.eup %1638 }
 0xbf8   :  { %v710_v61 = vmul.f32 %v1639_v58, %v615_v45 }
 0xc5b   :  { %v713_v59 = vpop.permute.xlu1 %712 }
 0xc5c   :  { %v715_v60 = vmul.f32 %v1639_v58, %v713_v59 }
 0xc5e   :  { %717 = vrot.lane.b32.xlu0 %v715_v60, %s1772_s20 }
 0xcd0   :  { %v718_v62 = vpop.permute.xlu0 %717 }
 0xcd1   :  { %v720_v22 = vadd.f32 %v718_v62, %v710_v61 }
 0xcd3   :  { %1640 = vtanh.f32 %v720_v22 }
 0xcdd   :  { %v1641_v63 = vpop.eup %1640 }
 0xcde   :  { %723 = vrot.lane.b32.xlu1 %v1641_v63, %s1771_s2 }
 0xd50   :  { %v724_v0 = vpop.permute.xlu1 %723 }
 0xd51   :  { %v726_v1 = vmul.f32 %v1639_v58, %v724_v0 }
 0xd53   :  { %728 = vrot.lane.b32.xlu0 %v726_v1, %s1772_s20 }
 0xdc5   :  { %v729_v2 = vpop.permute.xlu0 %728 }
 0xdc6   :  { %732 = vst.msk [vmem:[#allocation3 + $0x20] sm:$0xff] %vm39_vm1, %v729_v2  ;;  %1485 = vmatmul.mubr.msk.f32.vlgmr.msra.gmra.mrb[10].mxu1 %vm39_vm1, %v729_v2 }
 0xdc7   :  { %1577 = vmatpush3.bf16.msra.mxu1 %v1856_v8  ;;  %1506 = vmatprep.mubr.msk.f32.mxu1 %vm1769_vm2, %v1770_v17 }
 0xdc8   :  { %1578 = vmatprep.subr.bf16.mxu1 %v1768_v11 }
 0xdcb   :  { %1580 = vmatpush3.bf16.msra.mxu1 %v1884_v16 }
 0xdcd   :  { %v1058_v35 = vld [vmem:[#allocation3 + $0x20] sm:$0xff] }
 0xe99   :  { %v803_v4 = vpop.f32.mrb[10].mxu1 }
 0xe9a   :  { %v807_v5 = vadd.f32 %v803_v4, %v177_v3  ;;  %v1486_v6 = vpop.f32.mrb[11].mxu1 }
 0xe9c   :  { %1642 = vtanh.f32 %v807_v5  ;;  %v1321_v9 = vmul.f32 -1.442695, %v807_v5 }
 0xe9e   :  { %1644 = vpow2.f32 %v1321_v9 }
 0xea6   :  { %v1643_v7 = vpop.eup %1642 }
 0xea7   :  { %817 = vrot.lane.b32.xlu1 %v1643_v7, %s1771_s2 }
 0xea8   :  { %v1645_v8 = vpop.eup %1644 }
 0xea9   :  { %v811_v10 = vadd.f32 1.0, %v1645_v8 }
 0xeab   :  { %1646 = vrcp.f32 %v811_v10 }
 0xeb5   :  { %v1647_v17 = vpop.eup %1646 }
 0xeb6   :  { %v815_v16 = vmul.f32 %v1647_v17, %v720_v22 }
 0xf19   :  { %v818_v12 = vpop.permute.xlu1 %817 }
 0xf1a   :  { %v820_v11 = vmul.f32 %v1647_v17, %v818_v12 }
 0xf1c   :  { %822 = vrot.lane.b32.xlu0 %v820_v11, %s1772_s20 }
 0xf8e   :  { %v823_v13 = vpop.permute.xlu0 %822 }
 0xf8f   :  { %v1999_v20 = vadd.f32 %v823_v13, %v815_v16 }
 0xf91   :  { %1648 = vtanh.f32 %v1999_v20 }
 0xf9b   :  { %v1649_v19 = vpop.eup %1648 }
 0xf9c   :  { %828 = vrot.lane.b32.xlu1 %v1649_v19, %s1771_s2 }
0x100e   :  { %v829_v21 = vpop.permute.xlu1 %828 }
0x100f   :  { %v831_v23 = vmul.f32 %v1647_v17, %v829_v21 }
0x1011   :  { %833 = vrot.lane.b32.xlu0 %v831_v23, %s1772_s20 }
0x1083   :  { %v834_v30 = vpop.permute.xlu0 %833 }
0x1084   :  { %837 = vst.msk [vmem:[#allocation3 + $0x28] sm:$0xff] %vm39_vm1, %v834_v30  ;;  %1496 = vmatmul.mubr.msk.f32.vlgmr.msra.gmra.mrb[8].mxu0 %vm39_vm1, %v834_v30 }
0x1085   :  { %1584 = vmatpush3.bf16.msra.mxu0 %v1581_v18  ;;  %1517 = vmatprep.mubr.msk.f32.mxu0 %vm39_vm1, %v1054_v31 }
0x1086   :  { %1586 = vmatprep.subr.bf16.mxu0 %v1585_v29 }
0x1089   :  { %1588 = vmatpush3.bf16.msra.mxu0 %v1585_v29 }
0x108b   :  { %v1059_v36 = vld [vmem:[#allocation3 + $0x28] sm:$0xff] }
0x108c   :  { %1518 = vmatmul.mubr.msk.f32.vlgmr.msra.gmra.mrb[10].mxu0 %vm39_vm1, %v1055_v32 }
0x108d   :  { %1520 = vmatprep.mubr.msk.f32.mxu0 %vm39_vm1, %v1056_v33 }
0x1090   :  { %1521 = vmatmul.mubr.msk.f32.gmra.mrb[12].mxu0 %vm39_vm1, %v1057_v34 }
0x1091   :  { %1523 = vmatprep.mubr.msk.f32.mxu0 %vm39_vm1, %v1058_v35 }
0x1094   :  { %1524 = vmatmul.mubr.msk.f32.gmra.mrb[14].mxu0 %vm39_vm1, %v1059_v36 }
0x1157   :  { %v908_v38 = vpop.f32.mrb[8].mxu0 }
0x1158   :  { %v912_v39 = vadd.f32 %v908_v38, %v182_v37  ;;  %v1497_v40 = vpop.f32.mrb[9].mxu0 }
0x115a   :  { %1650 = vtanh.f32 %v912_v39  ;;  %v1323_v11 = vmul.f32 -1.442695, %v912_v39 }
0x115f   :  { %v1519_v42 = vpop.f32.mrb[10].mxu0 }
0x1160   :  { %v1169_v43 = vadd.f32 %v1519_v42, %v2029_v41  ;;  %v1163_v44 = vpop.f32.mrb[11].mxu0 }
0x1161   :  { %v1164_v45 = vadd.f32 %v2029_v41, %v1163_v44 }
0x1162   :  { %v1336_v46 = vmul.f32 -1.442695, %v1169_v43 }
0x1163   :  { %v1335_v47 = vmul.f32 -1.442695, %v1164_v45  ;;  %v1522_v48 = vpop.f32.mrb[12].mxu0 }
0x1164   :  { %v1651_v49 = vpop.eup %1650  ;;  %1652 = vpow2.f32 %v1336_v46  ;;  %v1179_v26 = vadd.f32 %v1522_v48, %v2029_v41  ;;  %v1173_v50 = vpop.f32.mrb[13].mxu0 }
0x1165   :  { %1654 = vpow2.f32 %v1335_v47  ;;  %v1174_v51 = vadd.f32 %v2029_v41, %v1173_v50  ;;  %922 = vrot.lane.b32.xlu1 %v1651_v49, %s1771_s2 }
0x1166   :  { %v1338_v52 = vmul.f32 -1.442695, %v1179_v26 }
0x1167   :  { %v1337_v53 = vmul.f32 -1.442695, %v1174_v51  ;;  %v1525_v54 = vpop.f32.mrb[14].mxu0 }
0x1168   :  { %1656 = vpow2.f32 %v1338_v52  ;;  %v1189_v55 = vadd.f32 %v1525_v54, %v2029_v41  ;;  %v1183_v56 = vpop.f32.mrb[15].mxu0 }
0x1169   :  { %v1184_v57 = vadd.f32 %v2029_v41, %v1183_v56  ;;  %1658 = vpow2.f32 %v1337_v53 }
0x116a   :  { %v1340_v58 = vmul.f32 -1.442695, %v1189_v55 }
0x116b   :  { %v1339_v59 = vmul.f32 -1.442695, %v1184_v57 }
0x116c   :  { %1660 = vpow2.f32 %v1340_v58 }
0x116d   :  { %1662 = vpow2.f32 %v1339_v59 }
0x116e   :  { %v1653_v60 = vpop.eup %1652 }
0x116f   :  { %v1655_v61 = vpop.eup %1654  ;;  %v1227_v62 = vadd.f32 1.0, %v1653_v60 }
0x1170   :  { %v1226_v22 = vadd.f32 1.0, %v1655_v61 }
0x1171   :  { %1664 = vrcp.f32 %v1227_v62 }
0x1172   :  { %v1657_v63 = vpop.eup %1656  ;;  %1666 = vrcp.f32 %v1226_v22 }
0x1173   :  { %v1229_v0 = vadd.f32 1.0, %v1657_v63  ;;  %v1659_v1 = vpop.eup %1658 }
0x1174   :  { %v1228_v2 = vadd.f32 1.0, %v1659_v1 }
0x1175   :  { %1668 = vrcp.f32 %v1229_v0 }
0x1176   :  { %v1661_v3 = vpop.eup %1660  ;;  %1670 = vrcp.f32 %v1228_v2 }
0x1177   :  { %v1663_v4 = vpop.eup %1662  ;;  %v1231_v5 = vadd.f32 1.0, %v1661_v3 }
0x1178   :  { %v1230_v6 = vadd.f32 1.0, %v1663_v4 }
0x1179   :  { %1672 = vrcp.f32 %v1231_v5 }
0x117a   :  { %1674 = vrcp.f32 %v1230_v6 }
0x117b   :  { %v1665_v7 = vpop.eup %1664  ;;  %1676 = vpow2.f32 %v1323_v11 }
0x117c   :  { %v1667_v9 = vpop.eup %1666  ;;  %1251 = vst [vmem:[#allocation4 + $0x8] sm:$0xff] %v1665_v7 }
0x117d   :  { %1250 = vst [vmem:[#allocation4] sm:$0xff] %v1667_v9 }
0x117f   :  { %v1669_v8 = vpop.eup %1668 }
0x1180   :  { %1253 = vst [vmem:[#allocation4 + $0x18] sm:$0xff] %v1669_v8  ;;  %v1671_v10 = vpop.eup %1670 }
0x1181   :  { %1252 = vst [vmem:[#allocation4 + $0x10] sm:$0xff] %v1671_v10 }
0x1183   :  { %v1673_v17 = vpop.eup %1672 }
0x1184   :  { %v1675_v12 = vpop.eup %1674  ;;  %1255 = vst [vmem:[#allocation4 + $0x28] sm:$0xff] %v1673_v17 }
0x1185   :  { %1254 = vst [vmem:[#allocation4 + $0x20] sm:$0xff] %v1675_v12  ;;  %v1677_v16 = vpop.eup %1676 }
0x1186   :  { %v916_v13 = vadd.f32 1.0, %v1677_v16 }
0x1188   :  { %1678 = vrcp.f32 %v916_v13 }
0x1192   :  { %v1679_v14 = vpop.eup %1678 }
0x1193   :  { %v920_v19 = vmul.f32 %v1679_v14, %v1999_v20  ;;  %v187_v20 = vadd.f32 %v1916_v25, %v1914_v24 }
0x11d7   :  { %v923_v15 = vpop.permute.xlu1 %922 }
0x11d8   :  { %v925_v18 = vmul.f32 %v1679_v14, %v923_v15 }
0x11da   :  { %927 = vrot.lane.b32.xlu0 %v925_v18, %s1772_s20 }
0x124c   :  { %v928_v21 = vpop.permute.xlu0 %927 }
0x124d   :  { %v930_v23 = vadd.f32 %v928_v21, %v920_v19 }
0x124f   :  { %1680 = vtanh.f32 %v930_v23 }
0x1259   :  { %v1681_v27 = vpop.eup %1680 }
0x125a   :  { %933 = vrot.lane.b32.xlu1 %v1681_v27, %s1771_s2 }
0x12cc   :  { %v934_v28 = vpop.permute.xlu1 %933 }
0x12cd   :  { %v936_v29 = vmul.f32 %v1679_v14, %v934_v28 }
0x12cf   :  { %938 = vrot.lane.b32.xlu0 %v936_v29, %s1772_s20 }
0x1341   :  { %v939_v30 = vpop.permute.xlu0 %938 }
0x1342   :  { %942 = vst.msk [vmem:[#allocation3 + $0x30] sm:$0xff] %vm39_vm1, %v939_v30  ;;  %1507 = vmatmul.mubr.msk.f32.vlgmr.msra.gmra.mrb[12].mxu1 %vm39_vm1, %v939_v30 }
0x1349   :  { %v1060_v31 = vld [vmem:[#allocation3 + $0x30] sm:$0xff] }
0x134a   :  { %1526 = vmatprep.mubr.msk.f32.mxu0 %vm39_vm1, %v1060_v31 }
0x1415   :  { %v1013_v32 = vpop.f32.mrb[12].mxu1 }
0x1416   :  { %v1017_v33 = vadd.f32 %v1013_v32, %v187_v20  ;;  %v1508_v34 = vpop.f32.mrb[13].mxu1 }
0x1418   :  { %1682 = vtanh.f32 %v1017_v33  ;;  %v1325_v36 = vmul.f32 -1.442695, %v1017_v33 }
0x141a   :  { %1684 = vpow2.f32 %v1325_v36 }
0x1422   :  { %v1683_v35 = vpop.eup %1682 }
0x1423   :  { %1027 = vrot.lane.b32.xlu1 %v1683_v35, %s1771_s2 }
0x1424   :  { %v1685_v37 = vpop.eup %1684 }
0x1425   :  { %v1021_v38 = vadd.f32 1.0, %v1685_v37 }
0x1427   :  { %1686 = vrcp.f32 %v1021_v38 }
0x1431   :  { %v1687_v39 = vpop.eup %1686 }
0x1432   :  { %v1025_v43 = vmul.f32 %v1687_v39, %v930_v23 }
0x1495   :  { %v1028_v40 = vpop.permute.xlu1 %1027 }
0x1496   :  { %v1030_v42 = vmul.f32 %v1687_v39, %v1028_v40 }
0x1498   :  { %1032 = vrot.lane.b32.xlu0 %v1030_v42, %s1772_s20 }
0x150a   :  { %v1033_v44 = vpop.permute.xlu0 %1032 }
0x150b   :  { %v1035_v24 = vadd.f32 %v1033_v44, %v1025_v43 }
0x150d   :  { %1688 = vtanh.f32 %v1035_v24 }
0x1517   :  { %v1689_v25 = vpop.eup %1688 }
0x1518   :  { %1038 = vrot.lane.b32.xlu1 %v1689_v25, %s1771_s2 }
0x151c   :  { %1050 = vrot.lane.b32.xlu1 %v1035_v24, %s1773_s7 }
0x158a   :  { %v1039_v45 = vpop.permute.xlu1 %1038 }
0x158b   :  { %v1041_v46 = vmul.f32 %v1687_v39, %v1039_v45 }
0x158d   :  { %1043 = vrot.lane.b32.xlu0 %v1041_v46, %s1772_s20 }
0x158e   :  { %v1051_v47 = vpop.permute.xlu1 %1050 }
0x158f   :  { %1053 = vst.msk [vmem:[#allocation8] sm:$0xff] %vm39_vm1, %v1051_v47 }
0x15ff   :  { %v1044_v48 = vpop.permute.xlu0 %1043 }
0x1600   :  { %1047 = vst.msk [vmem:[#allocation3 + $0x38] sm:$0xff] %vm39_vm1, %v1044_v48  ;;  %1048 = vst.msk [vmem:[#allocation6] sm:$0xff] %vm39_vm1, %v1044_v48 }
0x1607   :  { %v1061_v49 = vld [vmem:[#allocation3 + $0x38] sm:$0xff] }
0x1608   :  { %1527 = vmatmul.mubr.msk.f32.gmra.mrb[16].mxu0 %vm39_vm1, %v1061_v49 }
0x1609   :  { %1709 = shalt.err (!%p1706_p4)
}
0x160a   :  { %s1710_s1 = scalar_lea.hbm %s2102_s9, 128 }
0x160b   :  { %p1711_p5 = scmp.ne.s32.totalorder %s2102_s9, %s1710_s1  ;;  %p1714_p6 = scmp.lt.u32.totalorder %s1710_s1, %s2102_s9 }
0x160d   :  { %p1716_p7 = pnand %p1714_p6, %p1711_p5 }
0x160f   :  { %1719 = shalt.err (!%p1716_p7)
}
0x1610   :  { %1279 = dma.vmem_to_hbm [thread:$0]  %s1277_s12, 128, %s2102_s9, [#allocation7]  }
0x1611   :  { %s1775_s20 = smov [#allocation8]  }
0x1612   :  { %s1286_s5 = sshll.u32 %s1775_s20, 4  ;;  %s1287_s5 = int_to_ptr.vmem [resolvable:$true] %s1286_s5 }
0x1613   :  { %s1720_s21 = scalar_lea.vmem %s1287_s5, 128  ;;  %p1725_p9 = scmp.lt.s32.totalorder %s1287_s5, %s1287_s5 }
0x1614   :  { %p1721_p8 = scmp.ne.s32.totalorder %s1287_s5, %s1720_s21  ;;  %p1726_p10 = scmp.lt.s32.totalorder %s1720_s21, %s1720_s21 }
0x1616   :  { %p1727_p11 = por %p1726_p10, %p1725_p9 }
0x1618   :  { %p1728_p12 = pnand %p1727_p11, %p1721_p8 }
0x161a   :  { %1731 = shalt.err (!%p1728_p12)
}
0x161b   :  { %s1732_s0 = scalar_lea.hbm %s2103_s10, 128 }
0x161c   :  { %p1733_p13 = scmp.ne.s32.totalorder %s2103_s10, %s1732_s0  ;;  %p1736_p0 = scmp.lt.u32.totalorder %s1732_s0, %s2103_s10 }
0x161e   :  { %p1738_p1 = pnand %p1736_p0, %p1733_p13 }
0x1620   :  { %1741 = shalt.err (!%p1738_p1)
}
0x1621   :  { %1289 = dma.vmem_to_hbm [thread:$0]  %s1287_s5, 128, %s2103_s10, [#allocation7]  }
0x1622   :  { %s1776_s28 = smov [#allocation4]  }
0x1623   :  { %s1263_s29 = sshll.u32 %s1776_s28, 4  ;;  %s1264_s29 = int_to_ptr.vmem [resolvable:$true] %s1263_s29 }
0x1624   :  { %s1742_s10 = scalar_lea.vmem %s1264_s29, 1024  ;;  %p1747_p3 = scmp.lt.s32.totalorder %s1264_s29, %s1264_s29 }
0x1625   :  { %p1743_p2 = scmp.ne.s32.totalorder %s1264_s29, %s1742_s10  ;;  %p1748_p4 = scmp.lt.s32.totalorder %s1742_s10, %s1742_s10 }
0x1627   :  { %p1749_p5 = por %p1748_p4, %p1747_p3 }
0x1629   :  { %p1750_p6 = pnand %p1749_p5, %p1743_p2 }
0x16db   :  { %v1528_v26 = vpop.f32.mrb[16].mxu0 }
0x16dc   :  { %v1199_v50 = vadd.f32 %v1528_v26, %v2029_v41  ;;  %v1193_v51 = vpop.f32.mrb[17].mxu0 }
0x16dd   :  { %v1194_v52 = vadd.f32 %v2029_v41, %v1193_v51 }
0x16de   :  { %v1342_v53 = vmul.f32 -1.442695, %v1199_v50 }
0x16df   :  { %v1341_v54 = vmul.f32 -1.442695, %v1194_v52 }
0x16e0   :  { %1690 = vpow2.f32 %v1342_v53 }
0x16e1   :  { %1692 = vpow2.f32 %v1341_v54 }
0x16ea   :  { %v1691_v55 = vpop.eup %1690 }
0x16eb   :  { %v1693_v56 = vpop.eup %1692  ;;  %v1233_v57 = vadd.f32 1.0, %v1691_v55 }
0x16ec   :  { %v1232_v58 = vadd.f32 1.0, %v1693_v56 }
0x16ed   :  { %1694 = vrcp.f32 %v1233_v57 }
0x16ee   :  { %1696 = vrcp.f32 %v1232_v58 }
0x16f7   :  { %v1695_v59 = vpop.eup %1694 }
0x16f8   :  { %v1697_v60 = vpop.eup %1696  ;;  %1257 = vst [vmem:[#allocation4 + $0x38] sm:$0xff] %v1695_v59 }
0x16f9   :  { %1256 = vst [vmem:[#allocation4 + $0x30] sm:$0xff] %v1697_v60 }
0x16fa   :  { %1753 = shalt.err (!%p1750_p6)
}
0x16fb   :  { %s1754_s7 = scalar_lea.hbm %s2101_s8, 1024 }
0x16fc   :  { %p1755_p7 = scmp.ne.s32.totalorder %s2101_s8, %s1754_s7  ;;  %p1758_p8 = scmp.lt.u32.totalorder %s1754_s7, %s2101_s8 }
0x16fe   :  { %p1760_p9 = pnand %p1758_p8, %p1755_p7 }
0x1700   :  { %1763 = shalt.err (!%p1760_p9)
}
0x1701   :  { %s1777_s15 = smov 128   ;;  %s1778_s1 = smov 8  }
0x1702   :  { %1269 = dma.vmem_to_hbm [thread:$0]  %s1264_s29, 1024, %s2101_s8, [#allocation5], %s1777_s15, %s1777_s15, %s1778_s1  }
0x1703   :  { %1764 = dma.done.wait [#allocation5], 1024  }
0x1704   :  { %1765 = vsyncadd [#allocation5], 4294966272 }
0x1705   :  { %1766 = dma.done.wait [#allocation7], 256  }
0x1706   :  { %1767 = vsyncadd [#allocation7], 4294967040 }
0x1707   :  { %1299 = vsyncpa [#allocation5], 1 }
0x1708   :  { %1300 = vsyncpa [#allocation7], 1 }

</bundles_post_ra>
